<compile_context>
chip_gen: v5e
topology: v5e:2x2
jax: 0.10.0
libtpu: 0.0.40
codegen_flags: <defaults>
</compile_context>

<pallas_src>
import jax
import jax.numpy as jnp
from jax import lax
from jax.experimental import pallas as pl
from jax.experimental.pallas import tpu as pltpu


# ----------------------------------------------------------------------------
# Weight folding (hoist out of the per-call path; depends only on weights/BN).
# ----------------------------------------------------------------------------
def _build_banded_rhs(w_hwio, out_scale, W, C):
    """Fold per-output-channel scale into HWIO weights and expand them into a
    banded (W*C, 3*W*C) matmul operand.

    For height-offset dh (column block dh), the (W*C, W*C) block satisfies
        R[w_in*C + ci, w_out*C + co] = w[dh, dw, ci, co] * out_scale[co]
    with dw = w_in - w_out + 1 and zeros outside the band, which implements the
    'SAME' zero padding along W implicitly.
    """
    wf = (w_hwio.astype(jnp.float32)
          * out_scale.astype(jnp.float32)[None, None, None, :])
    WC = W * C
    blocks = []
    for dh in range(3):
        r = jnp.zeros((W, C, W, C), jnp.float32)
        for dw in range(3):
            band = jnp.eye(W, k=1 - dw, dtype=jnp.float32)   # band[w_in, w_out]
            r = r + jnp.einsum('io,ab->iaob', band, wf[dh, dw])
        blocks.append(r.reshape(WC, WC))
    return jnp.concatenate(blocks, axis=1)                    # (WC, 3*WC)


def fold_resblock_params(w1, w2, scale1, bias1, scale2, bias2, res_scale,
                         W, C, mxu_dtype=jnp.bfloat16):
    """Fold BN scales (and res_scale) into banded bf16 conv weights and
    lane-dense f32 biases.  Call once per ResBlock, reuse across forwards."""
    s2 = scale2 * res_scale
    b2 = bias2 * res_scale
    r1 = _build_banded_rhs(w1, scale1, W, C).astype(mxu_dtype)   # (WC, 3*WC)
    r2 = _build_banded_rhs(w2, s2, W, C).astype(mxu_dtype)       # (WC, 3*WC)
    b1p = jnp.tile(bias1.astype(jnp.float32), W).reshape(1, W * C)
    b2p = jnp.tile(jnp.asarray(b2, jnp.float32), W).reshape(1, W * C)
    return r1, r2, b1p, b2p


# ----------------------------------------------------------------------------
# Kernel
# ----------------------------------------------------------------------------
def _resblock_kernel(x_ref, r1_ref, r2_ref, b1_ref, b2_ref, out_ref):
    # x_ref  : (Bn, H, W*C)   lane-dense packed input block
    # r*_ref : (W*C, 3*W*C)   banded conv weights (bf16, BN scale/res_scale folded)
    # b*_ref : (1, W*C)       lane-dense folded BN bias (f32)
    # out_ref: (Bn, H, W*C)
    bn, H, WC = out_ref.shape
    M = bn * H

    x = x_ref[...].reshape(M, WC).astype(jnp.float32)

    # Boundary masks for the H-direction zero padding, computed once and reused
    # by both convs.  (M, 1) compares broadcast over the 128 lanes in the where.
    row_in_img = lax.rem(lax.broadcasted_iota(jnp.int32, (M, 1), 0), H)
    mask_top = row_in_img >= 1         # output rows that receive a row-(h-1) term
    mask_bot = row_in_img <= H - 2     # output rows that receive a row-(h+1) term

    def conv3x3(inp, r_ref):
        # One MXU matmul covering all three height offsets (K = WC, N = 3*WC),
        # bf16 operands, f32 accumulation.
        p = jnp.dot(inp.astype(r_ref.dtype), r_ref[...],
                    preferred_element_type=jnp.float32)
        c0 = p[:, :WC]            # row r with dh=0 weights -> output row r+1
        c1 = p[:, WC:2 * WC]      # row r with dh=1 weights -> output row r
        c2 = p[:, 2 * WC:]        # row r with dh=2 weights -> output row r-1
        # Shift contributions to the rows they belong to; mask the zero-padded
        # boundary rows (and image boundaries inside a batch block).
        down = jnp.where(mask_top, pltpu.roll(c0, 1, axis=0), 0.0)
        up = jnp.where(mask_bot, pltpu.roll(c2, M - 1, axis=0), 0.0)
        return down + c1 + up

    # conv1 (+ folded BN1 scale) + bias + ReLU
    y = conv3x3(x, r1_ref) + b1_ref[0]
    y = jnp.maximum(y, 0.0)

    # conv2 (+ folded BN2 scale * res_scale) + bias
    r = conv3x3(y, r2_ref) + b2_ref[0]

    # residual add
    out_ref[...] = (r + x).reshape(bn, H, WC).astype(out_ref.dtype)


# ----------------------------------------------------------------------------
# Wrappers
# ----------------------------------------------------------------------------
def _pick_batch_block(N, H, *, m_max=2048, m_split_min=256):
    """Pick bn so M = bn*H fills the MXU (target up to 2048 rows per step, which
    also bounds per-step VMEM for v7x), then split in two only when each half
    still has M >= 256 (v7x's two TensorCores); never shrink below that just to
    get two steps (pure overhead on single-TC v5e/v6e)."""
    bn = 1
    for d in range(1, N + 1):
        if N % d == 0 and d * H <= m_max:
            bn = d
    if bn == N and N % 2 == 0 and (N // 2) * H >= m_split_min:
        bn = N // 2
    return bn


def resblock_forward_packed(x_packed, r1, r2, b1p, b2p, *, batch_block=None):
    """ResBlock forward on the packed (N, H, W*C) layout (preferred between
    consecutive ResBlocks: no NCHW<->packed HBM round trips)."""
    N, H, WC = x_packed.shape
    assert WC % 128 == 0, "packed trailing dim W*C must be a multiple of 128 lanes"
    assert H % 8 == 0, "H must be a multiple of 8 sublanes"

    bn = batch_block if batch_block is not None else _pick_batch_block(N, H)
    assert N % bn == 0, "batch_block must divide N"
    grid = (N // bn,)

    return pl.pallas_call(
        _resblock_kernel,
        out_shape=jax.ShapeDtypeStruct((N, H, WC), x_packed.dtype),
        grid_spec=pltpu.PrefetchScalarGridSpec(
            num_scalar_prefetch=0,
            grid=grid,
            in_specs=[
                pl.BlockSpec((bn, H, WC), lambda n: (n, 0, 0)),
                # Constant-index weight/bias blocks: resident across grid steps,
                # no per-step weight DMA.
                pl.BlockSpec((WC, 3 * WC), lambda n: (0, 0)),
                pl.BlockSpec((WC, 3 * WC), lambda n: (0, 0)),
                pl.BlockSpec((1, WC), lambda n: (0, 0)),
                pl.BlockSpec((1, WC), lambda n: (0, 0)),
            ],
            out_specs=pl.BlockSpec((bn, H, WC), lambda n: (n, 0, 0)),
        ),
        compiler_params=pltpu.CompilerParams(
            dimension_semantics=("parallel",)),
    )(x_packed, r1, r2, b1p, b2p)


def resblock_forward(x_nchw, w1, w2, scale1, bias1, scale2, bias2,
                     res_scale=1.0, batch_block=None, mxu_dtype=jnp.bfloat16):
    """Pallas ResBlock forward on NCHW input; conv weights HWIO (3,3,C,C).

    For a stack of ResBlocks, call fold_resblock_params() once per block and
    resblock_forward_packed() on the packed layout instead (the NCHW<->packed
    transposes here are extra full HBM passes over x/out)."""
    N, C, H, W = x_nchw.shape
    params = fold_resblock_params(w1, w2, scale1, bias1, scale2, bias2,
                                  res_scale, W, C, mxu_dtype)
    x = jnp.transpose(x_nchw, (0, 2, 3, 1)).reshape(N, H, W * C)
    out = resblock_forward_packed(x, *params, batch_block=batch_block)
    return jnp.transpose(out.reshape(N, H, W, C), (0, 3, 1, 2))


def resblock_reference(x_nchw, w1, w2, scale1, bias1, scale2, bias2,
                       res_scale=1.0):
    """Pure-JAX reference (lax conv, f32) for correctness checking."""
    x = jnp.transpose(x_nchw, (0, 2, 3, 1))
    dn = ("NHWC", "HWIO", "NHWC")
    y = lax.conv_general_dilated(x, w1, (1, 1), "SAME", dimension_numbers=dn)
    y = y * scale1 + bias1
    y = jnp.maximum(y, 0.0)
    y = lax.conv_general_dilated(y, w2, (1, 1), "SAME", dimension_numbers=dn)
    y = y * scale2 + bias2
    out = y * res_scale + x
    return jnp.transpose(out, (0, 3, 1, 2))


if __name__ == "__main__":
    # ResBlock(n_feats=8, kernel_size=3, bias=False, bn=True, act=ReLU, res_scale=1)
    N, C, H, W = 2, 8, 16, 16          # W * C == 128 -> lane-dense packing
    res_scale = 1.0
    eps = 1e-5                          # PyTorch BatchNorm2d default

    key = jax.random.PRNGKey(0)
    keys = jax.random.split(key, 12)

    x = jax.random.normal(keys[0], (N, C, H, W), jnp.float32)

    # Conv weights, HWIO layout (PyTorch OIHW (C,C,3,3) transposed to (3,3,C,C)).
    w1 = jax.random.normal(keys[1], (3, 3, C, C), jnp.float32) * 0.1
    w2 = jax.random.normal(keys[2], (3, 3, C, C), jnp.float32) * 0.1

    # BatchNorm parameters + running stats (eval mode), folded to scale/bias.
    gamma1 = 1.0 + 0.1 * jax.random.normal(keys[3], (C,), jnp.float32)
    beta1 = 0.1 * jax.random.normal(keys[4], (C,), jnp.float32)
    mean1 = 0.1 * jax.random.normal(keys[5], (C,), jnp.float32)
    var1 = 1.0 + 0.05 * jax.random.uniform(keys[6], (C,), jnp.float32)

    gamma2 = 1.0 + 0.1 * jax.random.normal(keys[7], (C,), jnp.float32)
    beta2 = 0.1 * jax.random.normal(keys[8], (C,), jnp.float32)
    mean2 = 0.1 * jax.random.normal(keys[9], (C,), jnp.float32)
    var2 = 1.0 + 0.05 * jax.random.uniform(keys[10], (C,), jnp.float32)

    scale1 = gamma1 / jnp.sqrt(var1 + eps)
    bias1 = beta1 - mean1 * scale1
    scale2 = gamma2 / jnp.sqrt(var2 + eps)
    bias2 = beta2 - mean2 * scale2

    # jit the whole forward so the wrapper-side folding/transposes fuse into
    # one compiled computation.
    fwd = jax.jit(lambda x_, w1_, w2_, s1_, b1_, s2_, b2_:
                  resblock_forward(x_, w1_, w2_, s1_, b1_, s2_, b2_,
                                   res_scale=res_scale))
    out = fwd(x, w1, w2, scale1, bias1, scale2, bias2)
    out = jax.block_until_ready(out)

    ref = resblock_reference(x, w1, w2, scale1, bias1, scale2, bias2, res_scale)
    ref = jax.block_until_ready(ref)

    assert out.shape == (N, C, H, W)
    # bf16 MXU operands -> small numeric drift vs the f32 lax-conv reference.
    assert jnp.allclose(out, ref, rtol=5e-2, atol=5e-2), (
        f"max abs err {jnp.max(jnp.abs(out - ref))}")

    print("KERNEL_OK")
</pallas_src>

<mosaic_0001>
module attributes {stable_mosaic.version = 11 : i64} {
  func.func @_resblock_kernel(%arg0: i32, %arg1: memref<2x16x128xf32, #tpu.memory_space<vmem>>, %arg2: memref<128x384xbf16, #tpu.memory_space<vmem>>, %arg3: memref<128x384xbf16, #tpu.memory_space<vmem>>, %arg4: memref<1x128xf32, #tpu.memory_space<vmem>>, %arg5: memref<1x128xf32, #tpu.memory_space<vmem>>, %arg6: memref<2x16x128xf32, #tpu.memory_space<vmem>>) attributes {dimension_semantics = [#tpu.dimension_semantics<parallel>], iteration_bounds = array<i64: 1>, scalar_prefetch = 0 : i64, scratch_operands = 0 : i64, tpu.core_type = #tpu.core_type<tc>, window_params = [{transform_indices = @transform_0, window_bounds = array<i64: 2, 16, 128>}, {pipeline_mode = #tpu.pipeline_mode<synchronous>, transform_indices = @transform_1, window_bounds = array<i64: 128, 384>}, {pipeline_mode = #tpu.pipeline_mode<synchronous>, transform_indices = @transform_2, window_bounds = array<i64: 128, 384>}, {pipeline_mode = #tpu.pipeline_mode<synchronous>, transform_indices = @transform_3, window_bounds = array<i64: 1, 128>}, {pipeline_mode = #tpu.pipeline_mode<synchronous>, transform_indices = @transform_4, window_bounds = array<i64: 1, 128>}, {transform_indices = @transform_5, window_bounds = array<i64: 2, 16, 128>}]} {
    %c0 = arith.constant 0 : index
    %c0_0 = arith.constant 0 : index
    %c0_1 = arith.constant 0 : index
    %0 = vector.load %arg1[%c0, %c0_0, %c0_1] : memref<2x16x128xf32, #tpu.memory_space<vmem>>, vector<2x16x128xf32>
    %1 = vector.shape_cast %0 : vector<2x16x128xf32> to vector<32x128xf32>
    %2 = tpu.iota {dimensions = array<i32: 0>} : vector<32x1xi32>
    %c16_i32 = arith.constant 16 : i32
    %3 = vector.broadcast %c16_i32 : i32 to vector<32x1xi32>
    %4 = arith.remsi %2, %3 : vector<32x1xi32>
    %c1_i32 = arith.constant 1 : i32
    %5 = vector.broadcast %c1_i32 : i32 to vector<32x1xi32>
    %6 = arith.cmpi sge, %4, %5 : vector<32x1xi32>
    %c14_i32 = arith.constant 14 : i32
    %7 = vector.broadcast %c14_i32 : i32 to vector<32x1xi32>
    %8 = arith.cmpi sle, %4, %7 : vector<32x1xi32>
    %9 = arith.truncf %1 : vector<32x128xf32> to vector<32x128xbf16>
    %c0_2 = arith.constant 0 : index
    %c0_3 = arith.constant 0 : index
    %10 = vector.load %arg2[%c0_2, %c0_3] : memref<128x384xbf16, #tpu.memory_space<vmem>>, vector<128x384xbf16>
    %cst = arith.constant dense<0.000000e+00> : vector<32x384xf32>
    %11 = tpu.matmul %9, %10, %cst {dimension_numbers = #tpu.dot_dimension_numbers<[1], [0], [0], [1], [0, 0, 1, 1], [], []>} : vector<32x128xbf16>, vector<128x384xbf16>, vector<32x384xf32> -> vector<32x384xf32>
    %12 = vector.extract_strided_slice %11 {offsets = [0, 0], sizes = [32, 128], strides = [1, 1]} : vector<32x384xf32> to vector<32x128xf32>
    %13 = vector.extract_strided_slice %11 {offsets = [0, 128], sizes = [32, 128], strides = [1, 1]} : vector<32x384xf32> to vector<32x128xf32>
    %14 = vector.extract_strided_slice %11 {offsets = [0, 256], sizes = [32, 128], strides = [1, 1]} : vector<32x384xf32> to vector<32x128xf32>
    %c1_i32_4 = arith.constant 1 : i32
    %15 = tpu.dynamic_rotate %12 by %c1_i32_4 dim 0 : vector<32x128xf32>, i32 -> vector<32x128xf32>
    %cst_5 = arith.constant 0.000000e+00 : f32
    %16 = vector.shape_cast %6 : vector<32x1xi1> to vector<32x1xi1>
    %17 = vector.broadcast %16 : vector<32x1xi1> to vector<32x128xi1>
    %18 = vector.broadcast %cst_5 : f32 to vector<32x128xf32>
    %19 = arith.select %17, %15, %18 : vector<32x128xi1>, vector<32x128xf32>
    %c31_i32 = arith.constant 31 : i32
    %20 = tpu.dynamic_rotate %14 by %c31_i32 dim 0 : vector<32x128xf32>, i32 -> vector<32x128xf32>
    %cst_6 = arith.constant 0.000000e+00 : f32
    %21 = vector.shape_cast %8 : vector<32x1xi1> to vector<32x1xi1>
    %22 = vector.broadcast %21 : vector<32x1xi1> to vector<32x128xi1>
    %23 = vector.broadcast %cst_6 : f32 to vector<32x128xf32>
    %24 = arith.select %22, %20, %23 : vector<32x128xi1>, vector<32x128xf32>
    %25 = arith.addf %19, %13 : vector<32x128xf32>
    %26 = arith.addf %25, %24 : vector<32x128xf32>
    %c0_7 = arith.constant 0 : index
    %c0_8 = arith.constant 0 : index
    %27 = vector.load %arg4[%c0_7, %c0_8] : memref<1x128xf32, #tpu.memory_space<vmem>>, vector<1x128xf32>
    %28 = vector.shape_cast %27 : vector<1x128xf32> to vector<128xf32>
    %29 = vector.shape_cast %28 : vector<128xf32> to vector<1x128xf32>
    %30 = vector.broadcast %29 : vector<1x128xf32> to vector<32x128xf32>
    %31 = arith.addf %26, %30 : vector<32x128xf32>
    %cst_9 = arith.constant 0.000000e+00 : f32
    %32 = vector.broadcast %cst_9 : f32 to vector<32x128xf32>
    %33 = arith.maximumf %31, %32 : vector<32x128xf32>
    %34 = arith.truncf %33 : vector<32x128xf32> to vector<32x128xbf16>
    %c0_10 = arith.constant 0 : index
    %c0_11 = arith.constant 0 : index
    %35 = vector.load %arg3[%c0_10, %c0_11] : memref<128x384xbf16, #tpu.memory_space<vmem>>, vector<128x384xbf16>
    %cst_12 = arith.constant dense<0.000000e+00> : vector<32x384xf32>
    %36 = tpu.matmul %34, %35, %cst_12 {dimension_numbers = #tpu.dot_dimension_numbers<[1], [0], [0], [1], [0, 0, 1, 1], [], []>} : vector<32x128xbf16>, vector<128x384xbf16>, vector<32x384xf32> -> vector<32x384xf32>
    %37 = vector.extract_strided_slice %36 {offsets = [0, 0], sizes = [32, 128], strides = [1, 1]} : vector<32x384xf32> to vector<32x128xf32>
    %38 = vector.extract_strided_slice %36 {offsets = [0, 128], sizes = [32, 128], strides = [1, 1]} : vector<32x384xf32> to vector<32x128xf32>
    %39 = vector.extract_strided_slice %36 {offsets = [0, 256], sizes = [32, 128], strides = [1, 1]} : vector<32x384xf32> to vector<32x128xf32>
    %c1_i32_13 = arith.constant 1 : i32
    %40 = tpu.dynamic_rotate %37 by %c1_i32_13 dim 0 : vector<32x128xf32>, i32 -> vector<32x128xf32>
    %cst_14 = arith.constant 0.000000e+00 : f32
    %41 = vector.shape_cast %6 : vector<32x1xi1> to vector<32x1xi1>
    %42 = vector.broadcast %41 : vector<32x1xi1> to vector<32x128xi1>
    %43 = vector.broadcast %cst_14 : f32 to vector<32x128xf32>
    %44 = arith.select %42, %40, %43 : vector<32x128xi1>, vector<32x128xf32>
    %c31_i32_15 = arith.constant 31 : i32
    %45 = tpu.dynamic_rotate %39 by %c31_i32_15 dim 0 : vector<32x128xf32>, i32 -> vector<32x128xf32>
    %cst_16 = arith.constant 0.000000e+00 : f32
    %46 = vector.shape_cast %8 : vector<32x1xi1> to vector<32x1xi1>
    %47 = vector.broadcast %46 : vector<32x1xi1> to vector<32x128xi1>
    %48 = vector.broadcast %cst_16 : f32 to vector<32x128xf32>
    %49 = arith.select %47, %45, %48 : vector<32x128xi1>, vector<32x128xf32>
    %50 = arith.addf %44, %38 : vector<32x128xf32>
    %51 = arith.addf %50, %49 : vector<32x128xf32>
    %c0_17 = arith.constant 0 : index
    %c0_18 = arith.constant 0 : index
    %52 = vector.load %arg5[%c0_17, %c0_18] : memref<1x128xf32, #tpu.memory_space<vmem>>, vector<1x128xf32>
    %53 = vector.shape_cast %52 : vector<1x128xf32> to vector<128xf32>
    %54 = vector.shape_cast %53 : vector<128xf32> to vector<1x128xf32>
    %55 = vector.broadcast %54 : vector<1x128xf32> to vector<32x128xf32>
    %56 = arith.addf %51, %55 : vector<32x128xf32>
    %57 = arith.addf %56, %1 : vector<32x128xf32>
    %58 = vector.shape_cast %57 : vector<32x128xf32> to vector<2x16x128xf32>
    %c0_19 = arith.constant 0 : index
    %c0_20 = arith.constant 0 : index
    %c0_21 = arith.constant 0 : index
    %59 = vector.load %arg6[%c0_19, %c0_20, %c0_21] : memref<2x16x128xf32, #tpu.memory_space<vmem>>, vector<2x16x128xf32>
    tpu.vector_store %arg6[%c0_19, %c0_20, %c0_21], %58 {strides = array<i32>} : memref<2x16x128xf32, #tpu.memory_space<vmem>>, vector<2x16x128xf32>,
    return
  }
  func.func @transform_0(%arg0: i32) -> (i32, i32, i32) {
    %c0_i32 = arith.constant 0 : i32
    %c0_i32_0 = arith.constant 0 : i32
    %c0_i32_1 = arith.constant 0 : i32
    return %arg0, %c0_i32, %c0_i32_0 : i32, i32, i32
  }
  func.func @transform_1(%arg0: i32) -> (i32, i32) {
    %c0_i32 = arith.constant 0 : i32
    %c0_i32_0 = arith.constant 0 : i32
    %c0_i32_1 = arith.constant 0 : i32
    return %c0_i32, %c0_i32_0 : i32, i32
  }
  func.func @transform_2(%arg0: i32) -> (i32, i32) {
    %c0_i32 = arith.constant 0 : i32
    %c0_i32_0 = arith.constant 0 : i32
    %c0_i32_1 = arith.constant 0 : i32
    return %c0_i32, %c0_i32_0 : i32, i32
  }
  func.func @transform_3(%arg0: i32) -> (i32, i32) {
    %c0_i32 = arith.constant 0 : i32
    %c0_i32_0 = arith.constant 0 : i32
    %c0_i32_1 = arith.constant 0 : i32
    return %c0_i32, %c0_i32_0 : i32, i32
  }
  func.func @transform_4(%arg0: i32) -> (i32, i32) {
    %c0_i32 = arith.constant 0 : i32
    %c0_i32_0 = arith.constant 0 : i32
    %c0_i32_1 = arith.constant 0 : i32
    return %c0_i32, %c0_i32_0 : i32, i32
  }
  func.func @transform_5(%arg0: i32) -> (i32, i32, i32) {
    %c0_i32 = arith.constant 0 : i32
    %c0_i32_0 = arith.constant 0 : i32
    %c0_i32_1 = arith.constant 0 : i32
    return %arg0, %c0_i32, %c0_i32_0 : i32, i32, i32
  }
}

</mosaic_0001>

<bundles_post_ra>
// kernel: tile.13
= control target key start
LH: loop header
LB: loop body
LE: loop exit
PB: predicated region body
PF: predicated region fallthrough
CT: control target
= control target key end

     0   :  { %s28_s0 = inlined_call_operand.vmem [shape: f32[8], index: 0, kind: input, shape index: {}]   ;;  %s29_s1 = inlined_call_operand.vmem [shape: f32[16,8], index: 1, kind: output, shape index: {}]  }
   0x1   :  { %v4_v0 = vld [vmem:[%s28_s0] ss:$0 sm:$0xff] }
   0x2   :  { %5 = vst [vmem:[%s29_s1] sm:$0xff] %v4_v0 }
   0x3   :  { %8 = vst [vmem:[%s29_s1 + $0x8] sm:$0xff] %v4_v0 }

// kernel: tile.14
= control target key start
LH: loop header
LB: loop body
LE: loop exit
PB: predicated region body
PF: predicated region fallthrough
CT: control target
= control target key end

     0   :  { %s131_s10 = smov 120   ;;  %s132_s11 = smov 104   ;;  %vm3_vm0 = vcmask 64512   ;;  %vm9_vm1 = vcmask 1048512   ;;  %vm15_vm2 = vcmask 982912   ;;  %vm21_vm3 = vcmask 917312   ;;  %s207_s0 = inlined_call_operand.vmem [shape: f32[16,8], index: 0, kind: input, shape index: {}]   ;;  %s208_s1 = inlined_call_operand.vmem [shape: f32[1,128], index: 1, kind: output, shape index: {}]  }
   0x1   :  { %v101_v0 = vld [vmem:[%s207_s0 + $0xf] sm:$0x1]   ;;  %v103_v1 = vld [vmem:[%s207_s0 + $0xd] sm:$0x1]   ;;  %v105_v2 = vld [vmem:[%s207_s0 + $0xb] sm:$0x1]  }
   0x2   :  { %7 = vrot.lane.b32.xlu0 %v101_v0, %s131_s10  ;;  %19 = vrot.lane.b32.xlu1 %v103_v1, %s132_s11  ;;  %s133_s14 = smov 88   ;;  %v102_v3 = vld [vmem:[%s207_s0 + $0xe] sm:$0x1]   ;;  %v104_v4 = vld [vmem:[%s207_s0 + $0xc] sm:$0x1]   ;;  %s134_s19 = smov 112  }
   0x3   :  { %31 = vrot.lane.b32.xlu2 %v105_v2, %s133_s14  ;;  %s135_s20 = smov 96   ;;  %v106_v5 = vld [vmem:[%s207_s0 + $0xa] sm:$0x1]   ;;  %s136_s23 = smov 80   ;;  %v107_v6 = vld [vmem:[%s207_s0 + $0x9] sm:$0x1]  }
   0x4   :  { %v108_v7 = vld [vmem:[%s207_s0 + $0x8] sm:$0x1]   ;;  %s137_s28 = smov 72   ;;  %s138_s29 = smov 64   ;;  %v109_v8 = vld [vmem:[%s207_s0 + $0x7] sm:$0x1]  }
   0x5   :  { %s139_s3 = smov 56   ;;  %v110_v9 = vld [vmem:[%s207_s0 + $0x6] sm:$0x1]   ;;  %v111_v10 = vld [vmem:[%s207_s0 + $0x5] sm:$0x1]   ;;  %s140_s8 = smov 48  }
   0x6   :  { %s141_s9 = smov 40   ;;  %v112_v11 = vld [vmem:[%s207_s0 + $0x4] sm:$0x1]   ;;  %s142_s12 = smov 32   ;;  %v113_v12 = vld [vmem:[%s207_s0 + $0x3] sm:$0x1]  }
   0x7   :  { %v114_v13 = vld [vmem:[%s207_s0 + $0x2] sm:$0x1]   ;;  %s143_s17 = smov 24   ;;  %s144_s18 = smov 16   ;;  %v115_v14 = vld [vmem:[%s207_s0 + $0x1] sm:$0x1]  }
   0x8   :  { %s145_s21 = smov 8   ;;  %v2_v15 = vld [vmem:[%s207_s0] sm:$0x1]   ;;  %vm27_vm4 = vcmask 851712   ;;  %vm33_vm5 = vcmask 786112   ;;  %vm39_vm6 = vcmask 720512  }
   0x9   :  { %4 = vst.msk [vmem:[#allocation0] sm:$0x1] %vm3_vm0, %v2_v15   ;;  %vm45_vm7 = vcmask 654912   ;;  %vm51_vm8 = vcmask 589312   ;;  %vm57_vm9 = vcmask 523712   ;;  %vm63_vm10 = vcmask 458112  }
   0xa   :  { %13 = vrot.lane.b32.xlu0 %v102_v3, %s134_s19  ;;  %25 = vrot.lane.b32.xlu1 %v104_v4, %s135_s20  ;;  %vm69_vm11 = vcmask 392512   ;;  %vm75_vm12 = vcmask 326912   ;;  %vm81_vm13 = vcmask 261312   ;;  %vm87_vm14 = vcmask 195712  }
   0xb   :  { %37 = vrot.lane.b32.xlu2 %v106_v5, %s136_s23  ;;  %vm93_vm15 = vcmask 130112  }
  0x12   :  { %43 = vrot.lane.b32.xlu0 %v107_v6, %s137_s28  ;;  %49 = vrot.lane.b32.xlu1 %v108_v7, %s138_s29 }
  0x13   :  { %55 = vrot.lane.b32.xlu2 %v109_v8, %s139_s3 }
  0x1a   :  { %61 = vrot.lane.b32.xlu0 %v110_v9, %s140_s8  ;;  %67 = vrot.lane.b32.xlu1 %v111_v10, %s141_s9 }
  0x1b   :  { %73 = vrot.lane.b32.xlu2 %v112_v11, %s142_s12 }
  0x22   :  { %79 = vrot.lane.b32.xlu0 %v113_v12, %s143_s17  ;;  %85 = vrot.lane.b32.xlu1 %v114_v13, %s144_s18 }
  0x23   :  { %91 = vrot.lane.b32.xlu2 %v115_v14, %s145_s21 }
  0x5d   :  { %v32_v16 = vpop.permute.xlu2 %31  }
  0x65   :  { %v38_v17 = vpop.permute.xlu2 %37  }
  0x6d   :  { %v56_v18 = vpop.permute.xlu2 %55  }
  0x74   :  { %v8_v19 = vpop.permute.xlu0 %7   ;;  %v20_v20 = vpop.permute.xlu1 %19  }
  0x75   :  { %10 = vst.msk [vmem:[#allocation0] sm:$0x1] %vm9_vm1, %v8_v19   ;;  %v74_v21 = vpop.permute.xlu2 %73  }
  0x7c   :  { %v14_v22 = vpop.permute.xlu0 %13   ;;  %v26_v23 = vpop.permute.xlu1 %25  }
  0x7d   :  { %16 = vst.msk [vmem:[#allocation0] sm:$0x1] %vm15_vm2, %v14_v22   ;;  %v92_v24 = vpop.permute.xlu2 %91  }
  0x7e   :  { %22 = vst.msk [vmem:[#allocation0] sm:$0x1] %vm21_vm3, %v20_v20  }
  0x7f   :  { %28 = vst.msk [vmem:[#allocation0] sm:$0x1] %vm27_vm4, %v26_v23  }
  0x80   :  { %34 = vst.msk [vmem:[#allocation0] sm:$0x1] %vm33_vm5, %v32_v16  }
  0x81   :  { %40 = vst.msk [vmem:[#allocation0] sm:$0x1] %vm39_vm6, %v38_v17  }
  0x84   :  { %v44_v25 = vpop.permute.xlu0 %43   ;;  %v50_v26 = vpop.permute.xlu1 %49  }
  0x85   :  { %46 = vst.msk [vmem:[#allocation0] sm:$0x1] %vm45_vm7, %v44_v25  }
  0x86   :  { %52 = vst.msk [vmem:[#allocation0] sm:$0x1] %vm51_vm8, %v50_v26  }
  0x87   :  { %58 = vst.msk [vmem:[#allocation0] sm:$0x1] %vm57_vm9, %v56_v18  }
  0x8c   :  { %v62_v27 = vpop.permute.xlu0 %61   ;;  %v68_v28 = vpop.permute.xlu1 %67  }
  0x8d   :  { %64 = vst.msk [vmem:[#allocation0] sm:$0x1] %vm63_vm10, %v62_v27  }
  0x8e   :  { %70 = vst.msk [vmem:[#allocation0] sm:$0x1] %vm69_vm11, %v68_v28  }
  0x8f   :  { %76 = vst.msk [vmem:[#allocation0] sm:$0x1] %vm75_vm12, %v74_v21  }
  0x94   :  { %v80_v29 = vpop.permute.xlu0 %79   ;;  %v86_v30 = vpop.permute.xlu1 %85  }
  0x95   :  { %82 = vst.msk [vmem:[#allocation0] sm:$0x1] %vm81_vm13, %v80_v29  }
  0x96   :  { %88 = vst.msk [vmem:[#allocation0] sm:$0x1] %vm87_vm14, %v86_v30  }
  0x97   :  { %94 = vst.msk [vmem:[#allocation0] sm:$0x1] %vm93_vm15, %v92_v24  }
  0x9e   :  { %v97_v31 = vld [vmem:[#allocation0] sm:$0x1] }
  0x9f   :  { %100 = vst [vmem:[%s208_s1] sm:$0x1] %v97_v31 }

// kernel: _lambda_.1
= control target key start
LH: loop header
LB: loop body
LE: loop exit
PB: predicated region body
PF: predicated region fallthrough
CT: control target
= control target key end

     0   :  { %s1346_s1 = inlined_call_operand.vmem [shape: bf16[128,384], index: 1, kind: input, shape index: {}]   ;;  %s1347_s0 = inlined_call_operand.vmem [shape: f32[2,16,128], index: 0, kind: input, shape index: {}]   ;;  %s1348_s3 = inlined_call_operand.vmem [shape: f32[1,128], index: 3, kind: input, shape index: {}]   ;;  %s1349_s2 = inlined_call_operand.vmem [shape: bf16[128,384], index: 2, kind: input, shape index: {}]   ;;  %s1350_s4 = inlined_call_operand.vmem [shape: f32[1,128], index: 4, kind: input, shape index: {}]   ;;  %s1351_s5 = inlined_call_operand.vmem [shape: f32[2,16,128], index: 5, kind: output, shape index: {}]  }
   0x1   :  { %v703_v0 = vld [vmem:[%s1346_s1 + $0xa8] sm:$0xf]  ;;  %v831_v1 = vld [vmem:[%s1346_s1 + $0xb0] sm:$0xf0]  ;;  %v711_v2 = vld [vmem:[%s1346_s1 + $0xb0] sm:$0xf] }
   0x2   :  { %v704_v3 = vor.u32 %v831_v1, %v703_v0  ;;  %v832_v4 = vld [vmem:[%s1346_s1 + $0xb8] sm:$0xf0]  ;;  %v830_v5 = vld [vmem:[%s1346_s1 + $0xac] sm:$0xf]  ;;  %v705_v6 = vld [vmem:[%s1346_s1 + $0xb4] sm:$0xf0] }
   0x3   :  { %v712_v7 = vor.u32 %v832_v4, %v711_v2  ;;  %v708_v8 = vor.u32 %v830_v5, %v705_v6  ;;  %v691_v9 = vld [vmem:[%s1346_s1 + $0x90] sm:$0xf]  ;;  %v828_v10 = vld [vmem:[%s1346_s1 + $0x98] sm:$0xf0]  ;;  %v699_v11 = vld [vmem:[%s1346_s1 + $0x98] sm:$0xf] }
   0x4   :  { %227 = vmatpush.bf16.msra.mxu0 %v704_v3  ;;  %v692_v12 = vor.u32 %v828_v10, %v691_v9  ;;  %v829_v13 = vld [vmem:[%s1346_s1 + $0xa0] sm:$0xf0]  ;;  %v827_v14 = vld [vmem:[%s1346_s1 + $0x94] sm:$0xf]  ;;  %v693_v15 = vld [vmem:[%s1346_s1 + $0x9c] sm:$0xf0] }
   0x5   :  { %265 = vmatpush.bf16.msra.mxu2 %v712_v7  ;;  %246 = vmatpush.bf16.msra.mxu1 %v708_v8  ;;  %v700_v16 = vor.u32 %v829_v13, %v699_v11  ;;  %v696_v17 = vor.u32 %v827_v14, %v693_v15  ;;  %v679_v18 = vld [vmem:[%s1346_s1 + $0x78] sm:$0xf]  ;;  %v825_v19 = vld [vmem:[%s1346_s1 + $0x80] sm:$0xf0]  ;;  %v687_v20 = vld [vmem:[%s1346_s1 + $0x80] sm:$0xf] }
   0x6   :  { %v826_v21 = vld [vmem:[%s1346_s1 + $0x88] sm:$0xf0]  ;;  %v824_v22 = vld [vmem:[%s1346_s1 + $0x7c] sm:$0xf]  ;;  %v681_v23 = vld [vmem:[%s1346_s1 + $0x84] sm:$0xf0]  ;;  %v680_v24 = vor.u32 %v825_v19, %v679_v18 }
   0x7   :  { %v688_v25 = vor.u32 %v826_v21, %v687_v20  ;;  %v684_v26 = vor.u32 %v824_v22, %v681_v23  ;;  %v667_v27 = vld [vmem:[%s1346_s1 + $0x60] sm:$0xf]  ;;  %v822_v28 = vld [vmem:[%s1346_s1 + $0x68] sm:$0xf0]  ;;  %v675_v29 = vld [vmem:[%s1346_s1 + $0x68] sm:$0xf] }
   0x8   :  { %228 = vmatpush.bf16.msra.mxu0 %v692_v12  ;;  %v823_v30 = vld [vmem:[%s1346_s1 + $0x70] sm:$0xf0]  ;;  %v821_v31 = vld [vmem:[%s1346_s1 + $0x64] sm:$0xf]  ;;  %v669_v32 = vld [vmem:[%s1346_s1 + $0x6c] sm:$0xf0]  ;;  %v668_v33 = vor.u32 %v822_v28, %v667_v27 }
   0x9   :  { %266 = vmatpush.bf16.msra.mxu2 %v700_v16  ;;  %247 = vmatpush.bf16.msra.mxu1 %v696_v17  ;;  %v676_v34 = vor.u32 %v823_v30, %v675_v29  ;;  %v672_v35 = vor.u32 %v821_v31, %v669_v32  ;;  %v655_v36 = vld [vmem:[%s1346_s1 + $0x48] sm:$0xf]  ;;  %v819_v37 = vld [vmem:[%s1346_s1 + $0x50] sm:$0xf0]  ;;  %v663_v38 = vld [vmem:[%s1346_s1 + $0x50] sm:$0xf] }
   0xa   :  { %v820_v39 = vld [vmem:[%s1346_s1 + $0x58] sm:$0xf0]  ;;  %v818_v40 = vld [vmem:[%s1346_s1 + $0x4c] sm:$0xf]  ;;  %v657_v41 = vld [vmem:[%s1346_s1 + $0x54] sm:$0xf0]  ;;  %v656_v42 = vor.u32 %v819_v37, %v655_v36 }
   0xb   :  { %v664_v43 = vor.u32 %v820_v39, %v663_v38  ;;  %v660_v44 = vor.u32 %v818_v40, %v657_v41  ;;  %v643_v45 = vld [vmem:[%s1346_s1 + $0x30] sm:$0xf]  ;;  %v816_v46 = vld [vmem:[%s1346_s1 + $0x38] sm:$0xf0]  ;;  %v651_v47 = vld [vmem:[%s1346_s1 + $0x38] sm:$0xf] }
   0xc   :  { %229 = vmatpush.bf16.msra.mxu0 %v680_v24  ;;  %v817_v48 = vld [vmem:[%s1346_s1 + $0x40] sm:$0xf0]  ;;  %v815_v49 = vld [vmem:[%s1346_s1 + $0x34] sm:$0xf]  ;;  %v645_v50 = vld [vmem:[%s1346_s1 + $0x3c] sm:$0xf0]  ;;  %v644_v51 = vor.u32 %v816_v46, %v643_v45 }
   0xd   :  { %267 = vmatpush.bf16.msra.mxu2 %v688_v25  ;;  %248 = vmatpush.bf16.msra.mxu1 %v684_v26  ;;  %v652_v52 = vor.u32 %v817_v48, %v651_v47  ;;  %v648_v53 = vor.u32 %v815_v49, %v645_v50  ;;  %v631_v54 = vld [vmem:[%s1346_s1 + $0x18] sm:$0xf]  ;;  %v813_v55 = vld [vmem:[%s1346_s1 + $0x20] sm:$0xf0]  ;;  %v639_v56 = vld [vmem:[%s1346_s1 + $0x20] sm:$0xf] }
   0xe   :  { %v814_v57 = vld [vmem:[%s1346_s1 + $0x28] sm:$0xf0]  ;;  %v812_v58 = vld [vmem:[%s1346_s1 + $0x1c] sm:$0xf]  ;;  %v633_v59 = vld [vmem:[%s1346_s1 + $0x24] sm:$0xf0]  ;;  %v632_v60 = vor.u32 %v813_v55, %v631_v54 }
   0xf   :  { %v640_v61 = vor.u32 %v814_v57, %v639_v56  ;;  %v636_v62 = vor.u32 %v812_v58, %v633_v59  ;;  %v619_v63 = vld [vmem:[%s1346_s1] sm:$0xf]  ;;  %v810_v0 = vld [vmem:[%s1346_s1 + $0x8] sm:$0xf0]  ;;  %v627_v1 = vld [vmem:[%s1346_s1 + $0x8] sm:$0xf] }
  0x10   :  { %230 = vmatpush.bf16.msra.mxu0 %v668_v33  ;;  %v811_v2 = vld [vmem:[%s1346_s1 + $0x10] sm:$0xf0]  ;;  %v809_v3 = vld [vmem:[%s1346_s1 + $0x4] sm:$0xf]  ;;  %v621_v4 = vld [vmem:[%s1346_s1 + $0xc] sm:$0xf0]  ;;  %v620_v5 = vor.u32 %v810_v0, %v619_v63 }
  0x11   :  { %268 = vmatpush.bf16.msra.mxu2 %v676_v34  ;;  %249 = vmatpush.bf16.msra.mxu1 %v672_v35  ;;  %v1052_v6 = vld [vmem:[%s1347_s0] sm:$0xff]  ;;  %v1057_v7 = vld [vmem:[%s1347_s0 + $0x8] sm:$0xff]  ;;  %v628_v8 = vor.u32 %v811_v2, %v627_v1  ;;  %v624_v9 = vor.u32 %v809_v3, %v621_v4  ;;  %v1064_v11 = vld [vmem:[%s1347_s0 + $0x10] sm:$0xff] }
  0x12   :  { %v65_v10 = vpack.c.bf16 %v1057_v7, %v1052_v6  ;;  %v1069_v12 = vld [vmem:[%s1347_s0 + $0x18] sm:$0xff]  ;;  %v799_v14 = vld [vmem:[%s1349_s2 + $0xa8] sm:$0xf]  ;;  %v855_v15 = vld [vmem:[%s1349_s2 + $0xb0] sm:$0xf0] }
  0x13   :  { %v66_v13 = vpack.c.bf16 %v1069_v12, %v1064_v11  ;;  %v854_v16 = vld [vmem:[%s1349_s2 + $0xac] sm:$0xf]  ;;  %v800_v17 = vor.u32 %v855_v15, %v799_v14  ;;  %v801_v18 = vld [vmem:[%s1349_s2 + $0xb4] sm:$0xf0]  ;;  %v807_v19 = vld [vmem:[%s1349_s2 + $0xb0] sm:$0xf] }
  0x14   :  { %231 = vmatpush.bf16.msra.mxu0 %v656_v42  ;;  %v856_v20 = vld [vmem:[%s1349_s2 + $0xb8] sm:$0xf0]  ;;  %v804_v21 = vor.u32 %v854_v16, %v801_v18  ;;  %v787_v23 = vld [vmem:[%s1349_s2 + $0x90] sm:$0xf]  ;;  %v851_v25 = vld [vmem:[%s1349_s2 + $0x94] sm:$0xf] }
  0x15   :  { %269 = vmatpush.bf16.msra.mxu2 %v664_v43  ;;  %250 = vmatpush.bf16.msra.mxu1 %v660_v44  ;;  %v1091_v22 = vor.u32 %v856_v20, %v807_v19  ;;  %v852_v24 = vld [vmem:[%s1349_s2 + $0x98] sm:$0xf0]  ;;  %v789_v27 = vld [vmem:[%s1349_s2 + $0x9c] sm:$0xf0]  ;;  %v795_v28 = vld [vmem:[%s1349_s2 + $0x98] sm:$0xf] }
  0x16   :  { %508 = vmatpush.bf16.msra.mxu3 %v800_v17  ;;  %v788_v26 = vor.u32 %v852_v24, %v787_v23  ;;  %v792_v29 = vor.u32 %v851_v25, %v789_v27  ;;  %v853_v30 = vld [vmem:[%s1349_s2 + $0xa0] sm:$0xf0]  ;;  %v775_v32 = vld [vmem:[%s1349_s2 + $0x78] sm:$0xf]  ;;  %v848_v34 = vld [vmem:[%s1349_s2 + $0x7c] sm:$0xf] }
  0x17   :  { %v1112_v31 = vor.u32 %v853_v30, %v795_v28  ;;  %v849_v33 = vld [vmem:[%s1349_s2 + $0x80] sm:$0xf0]  ;;  %v777_v36 = vld [vmem:[%s1349_s2 + $0x84] sm:$0xf0]  ;;  %v783_v37 = vld [vmem:[%s1349_s2 + $0x80] sm:$0xf] }
  0x18   :  { %232 = vmatpush.bf16.msra.mxu0 %v644_v51  ;;  %v776_v35 = vor.u32 %v849_v33, %v775_v32  ;;  %v850_v38 = vld [vmem:[%s1349_s2 + $0x88] sm:$0xf0]  ;;  %v780_v39 = vor.u32 %v848_v34, %v777_v36  ;;  %v763_v41 = vld [vmem:[%s1349_s2 + $0x60] sm:$0xf]  ;;  %v845_v44 = vld [vmem:[%s1349_s2 + $0x64] sm:$0xf]  ;;  %v24_v32 = vlaneseq }
  0x19   :  { %270 = vmatpush.bf16.msra.mxu2 %v652_v52  ;;  %251 = vmatpush.bf16.msra.mxu1 %v648_v53  ;;  %v1133_v40 = vor.u32 %v850_v38, %v783_v37  ;;  %v846_v42 = vld [vmem:[%s1349_s2 + $0x68] sm:$0xf0]  ;;  %v765_v45 = vld [vmem:[%s1349_s2 + $0x6c] sm:$0xf0]  ;;  %v771_v46 = vld [vmem:[%s1349_s2 + $0x68] sm:$0xf] }
  0x1a   :  { %509 = vmatpush.bf16.msra.mxu3 %v788_v26  ;;  %v764_v43 = vor.u32 %v846_v42, %v763_v41  ;;  %v768_v47 = vor.u32 %v845_v44, %v765_v45  ;;  %v847_v48 = vld [vmem:[%s1349_s2 + $0x70] sm:$0xf0]  ;;  %v751_v50 = vld [vmem:[%s1349_s2 + $0x48] sm:$0xf]  ;;  %v842_v52 = vld [vmem:[%s1349_s2 + $0x4c] sm:$0xf] }
  0x1b   :  { %v1154_v49 = vor.u32 %v847_v48, %v771_v46  ;;  %v843_v51 = vld [vmem:[%s1349_s2 + $0x50] sm:$0xf0]  ;;  %v753_v54 = vld [vmem:[%s1349_s2 + $0x54] sm:$0xf0]  ;;  %v759_v55 = vld [vmem:[%s1349_s2 + $0x50] sm:$0xf] }
  0x1c   :  { %233 = vmatpush.bf16.msra.mxu0 %v632_v60  ;;  %v752_v53 = vor.u32 %v843_v51, %v751_v50  ;;  %v756_v56 = vor.u32 %v842_v52, %v753_v54  ;;  %v844_v57 = vld [vmem:[%s1349_s2 + $0x58] sm:$0xf0]  ;;  %v739_v59 = vld [vmem:[%s1349_s2 + $0x30] sm:$0xf]  ;;  %v741_v63 = vld [vmem:[%s1349_s2 + $0x3c] sm:$0xf0] }
  0x1d   :  { %271 = vmatpush.bf16.msra.mxu2 %v640_v61  ;;  %252 = vmatpush.bf16.msra.mxu1 %v636_v62  ;;  %v1175_v58 = vor.u32 %v844_v57, %v759_v55  ;;  %v840_v60 = vld [vmem:[%s1349_s2 + $0x38] sm:$0xf0]  ;;  %v839_v62 = vld [vmem:[%s1349_s2 + $0x34] sm:$0xf]  ;;  %v747_v0 = vld [vmem:[%s1349_s2 + $0x38] sm:$0xf] }
  0x1e   :  { %510 = vmatpush.bf16.msra.mxu3 %v776_v35  ;;  %v740_v61 = vor.u32 %v840_v60, %v739_v59  ;;  %v744_v1 = vor.u32 %v839_v62, %v741_v63  ;;  %v841_v2 = vld [vmem:[%s1349_s2 + $0x40] sm:$0xf0]  ;;  %v727_v4 = vld [vmem:[%s1349_s2 + $0x18] sm:$0xf]  ;;  %v838_v16 = vld [vmem:[%s1349_s2 + $0x28] sm:$0xf0] }
  0x1f   :  { %v1196_v3 = vor.u32 %v841_v2, %v747_v0  ;;  %v715_v19 = vld [vmem:[%s1349_s2] sm:$0xf]  ;;  %v834_v20 = vld [vmem:[%s1349_s2 + $0x8] sm:$0xf0]  ;;  %v717_v24 = vld [vmem:[%s1349_s2 + $0xc] sm:$0xf0] }
  0x20   :  { %234 = vmatpush.bf16.msra.mxu0 %v620_v5  ;;  %v837_v5 = vld [vmem:[%s1349_s2 + $0x20] sm:$0xf0]  ;;  %v716_v23 = vor.u32 %v834_v20, %v715_v19  ;;  %v723_v25 = vld [vmem:[%s1349_s2 + $0x8] sm:$0xf]  ;;  %v835_v26 = vld [vmem:[%s1349_s2 + $0x10] sm:$0xf0] }
  0x21   :  { %272 = vmatpush.bf16.msra.mxu2 %v628_v8  ;;  %253 = vmatpush.bf16.msra.mxu1 %v624_v9  ;;  %v836_v8 = vld [vmem:[%s1349_s2 + $0x1c] sm:$0xf]  ;;  %v728_v9 = vor.u32 %v837_v5, %v727_v4  ;;  %v1240_v28 = vor.u32 %v835_v26, %v723_v25  ;;  %v1245_v34 = vshrl.u32 %v24_v32, 7  ;;  %v873_v59 = vld [vmem:[%s1348_s3] ss:$0 sm:$0xff] }
  0x22   :  { %511 = vmatpush.bf16.msra.mxu3 %v764_v43 }
  0x23   :  { %235 = vmatmul.bf16.vlgmr.msra.gmra.mxu0 %v65_v10  ;;  %v26_v37 = vadd.s32 8, %v1245_v34  ;;  %v27_v38 = vadd.s32 16, %v1245_v34  ;;  %vm288_vm0 = vcmp.lt.s32.totalorder %v1245_v34, 1  ;;  %v28_v50 = vadd.s32 24, %v1245_v34 }
  0x24   :  { %273 = vmatmul.bf16.vlgmr.msra.gmra.mxu2 %v65_v10  ;;  %254 = vmatmul.bf16.vlgmr.msra.gmra.mxu1 %v65_v10  ;;  %v729_v10 = vld [vmem:[%s1349_s2 + $0x24] sm:$0xf0]  ;;  %vm309_vm2 = vcmp.lt.s32.totalorder %v1245_v34, 7 }
  0x25   :  { %527 = vmatpush.bf16.msrb.mxu0 %v804_v21  ;;  %546 = vmatpush.bf16.msrb.mxu1 %v1091_v22  ;;  %v732_v15 = vor.u32 %v836_v8, %v729_v10  ;;  %v47_v44 = vand.u32 15, %v27_v38  ;;  %v54_v63 = vand.u32 15, %v28_v50 }
  0x26   :  { %857 = vmatpush.bf16.msrb.mxu2 %v804_v21  ;;  %512 = vmatpush.bf16.msra.mxu3 %v752_v53  ;;  %v833_v21 = vld [vmem:[%s1349_s2 + $0x4] sm:$0xf] }
  0x27   :  { %v720_v27 = vor.u32 %v833_v21, %v717_v24  ;;  %vm1269_vm4 = vcmp.ge.s32.totalorder %v47_v44, 1  ;;  %vm1292_vm5 = vcmp.le.s32.totalorder %v54_v63, 14 }
  0x29   :  { %528 = vmatpush.bf16.msrb.mxu0 %v792_v29  ;;  %547 = vmatpush.bf16.msrb.mxu1 %v1112_v31 }
  0x2a   :  { %858 = vmatpush.bf16.msrb.mxu2 %v792_v29  ;;  %513 = vmatpush.bf16.msra.mxu3 %v740_v61 }
  0x2d   :  { %529 = vmatpush.bf16.msrb.mxu0 %v780_v39  ;;  %548 = vmatpush.bf16.msrb.mxu1 %v1133_v40 }
  0x2e   :  { %859 = vmatpush.bf16.msrb.mxu2 %v780_v39  ;;  %514 = vmatpush.bf16.msra.mxu3 %v728_v9  ;;  %v40_v39 = vand.u32 15, %v26_v37 }
  0x30   :  { %vm1256_vm1 = vcmp.le.s32.totalorder %v40_v39, 14 }
  0x31   :  { %530 = vmatpush.bf16.msrb.mxu0 %v768_v47  ;;  %549 = vmatpush.bf16.msrb.mxu1 %v1154_v49 }
  0x32   :  { %860 = vmatpush.bf16.msrb.mxu2 %v768_v47  ;;  %515 = vmatpush.bf16.msra.mxu3 %v716_v23 }
  0x33   :  { %240 = vmatmul.bf16.gmra.mxu0 %v66_v13 }
  0x34   :  { %278 = vmatmul.bf16.gmra.mxu2 %v66_v13  ;;  %259 = vmatmul.bf16.gmra.mxu1 %v66_v13  ;;  %v735_v13 = vld [vmem:[%s1349_s2 + $0x20] sm:$0xf] }
  0x35   :  { %531 = vmatpush.bf16.msrb.mxu0 %v756_v56  ;;  %550 = vmatpush.bf16.msrb.mxu1 %v1175_v58  ;;  %v1219_v18 = vor.u32 %v838_v16, %v735_v13 }
  0x36   :  { %861 = vmatpush.bf16.msrb.mxu2 %v756_v56  ;;  %865 = vmatpush.bf16.msrb.mxu3 %v1091_v22 }
  0x39   :  { %532 = vmatpush.bf16.msrb.mxu0 %v744_v1  ;;  %551 = vmatpush.bf16.msrb.mxu1 %v1196_v3 }
  0x3a   :  { %862 = vmatpush.bf16.msrb.mxu2 %v744_v1  ;;  %866 = vmatpush.bf16.msrb.mxu3 %v1112_v31  ;;  %v33_v31 = vand.u32 15, %v1245_v34 }
  0x3c   :  { %vm1262_vm3 = vcmp.ge.s32.totalorder %v33_v31, 1 }
  0x3d   :  { %533 = vmatpush.bf16.msrb.mxu0 %v732_v15  ;;  %552 = vmatpush.bf16.msrb.mxu1 %v1219_v18 }
  0x3e   :  { %863 = vmatpush.bf16.msrb.mxu2 %v732_v15  ;;  %867 = vmatpush.bf16.msrb.mxu3 %v1133_v40 }
  0x41   :  { %534 = vmatpush.bf16.msrb.mxu0 %v720_v27  ;;  %553 = vmatpush.bf16.msrb.mxu1 %v1240_v28 }
  0x42   :  { %864 = vmatpush.bf16.msrb.mxu2 %v720_v27  ;;  %868 = vmatpush.bf16.msrb.mxu3 %v1154_v49 }
  0x46   :  { %869 = vmatpush.bf16.msrb.mxu3 %v1175_v58 }
  0x4a   :  { %870 = vmatpush.bf16.msrb.mxu3 %v1196_v3 }
  0x4e   :  { %871 = vmatpush.bf16.msrb.mxu3 %v1219_v18 }
  0x52   :  { %872 = vmatpush.bf16.msrb.mxu3 %v1240_v28 }
  0xa0   :  { %v236_v14 = vpop.f32.mrf.mxu0 }
  0xa1   :  { %v1217_v17 = vpop.f32.mrf.mxu1  ;;  %v284_v41 = vrot.slane %v236_v14, 7 }
  0xa7   :  { %v274_v29 = vpop.f32.mrf.mxu2 }
  0xa8   :  { %v238_v30 = vpop.f32.mrf.mxu0  ;;  %v305_v60 = vrot.slane %v274_v29, 1 }
  0xa9   :  { %v257_v33 = vpop.f32.mrf.mxu1  ;;  %v285_v22 = vrot.slane %v238_v30, 7 }
  0xab   :  { %v291_v40 = vsel %vm288_vm0, %v284_v41, %v285_v22 }
  0xac   :  { %v327_v53 = vadd.f32 %v291_v40, %v257_v33 }
  0xaf   :  { %v276_v35 = vpop.f32.mrf.mxu2 }
  0xb0   :  { %v241_v36 = vpop.f32.mrf.mxu0  ;;  %v306_v46 = vrot.slane %v276_v35, 1 }
  0xb1   :  { %v260_v42 = vpop.f32.mrf.mxu1  ;;  %v286_v43 = vrot.slane %v241_v36, 7 }
  0xb2   :  { %v312_v1 = vsel %vm309_vm2, %v305_v60, %v306_v46 }
  0xb3   :  { %v290_v56 = vsel %vm288_vm0, %v285_v22, %v286_v43 }
  0xb4   :  { %v303_v2 = vsel %vm1269_vm4, %v290_v56, 0.0 }
  0xb5   :  { %v328_v14 = vadd.f32 %v303_v2, %v260_v42 }
  0xb7   :  { %v279_v45 = vpop.f32.mrf.mxu2 }
  0xb8   :  { %v307_v48 = vrot.slane %v279_v45, 1  ;;  %v243_v49 = vpop.f32.mrf.mxu0 }
  0xb9   :  { %v287_v52 = vrot.slane %v243_v49, 7  ;;  %v262_v3 = vpop.f32.mrf.mxu1 }
  0xba   :  { %v311_v54 = vsel %vm309_vm2, %v306_v46, %v307_v48  ;;  %v874_v46 = vld [vmem:[%s1350_s4] ss:$0 sm:$0xff] }
  0xbb   :  { %v323_v57 = vsel %vm1256_vm1, %v311_v54, 0.0  ;;  %v292_v58 = vsel %vm288_vm0, %v287_v52, %v284_v41  ;;  %v289_v4 = vsel %vm288_vm0, %v286_v43, %v287_v52 }
  0xbc   :  { %v331_v61 = vadd.f32 %v327_v53, %v323_v57  ;;  %v301_v62 = vsel %vm1262_vm3, %v292_v58, 0.0  ;;  %v329_v16 = vadd.f32 %v289_v4, %v262_v3 }
  0xbd   :  { %v326_v0 = vadd.f32 %v301_v62, %v1217_v17 }
  0xbe   :  { %v339_v9 = vadd.f32 %v873_v59, %v331_v61 }
  0xbf   :  { %v281_v5 = vpop.f32.mrf.mxu2  ;;  %v330_v8 = vadd.f32 %v326_v0, %v312_v1 }
  0xc0   :  { %v308_v13 = vrot.slane %v281_v5, 1  ;;  %v343_v23 = vmax.f32 %v339_v9, 0.0 }
  0xc1   :  { %v338_v15 = vadd.f32 %v873_v59, %v330_v8 }
  0xc2   :  { %v310_v17 = vsel %vm309_vm2, %v307_v48, %v308_v13  ;;  %v313_v18 = vsel %vm309_vm2, %v308_v13, %v305_v60 }
  0xc3   :  { %v325_v19 = vsel %vm1292_vm5, %v313_v18, 0.0  ;;  %v332_v20 = vadd.f32 %v328_v14, %v310_v17  ;;  %v342_v21 = vmax.f32 %v338_v15, 0.0 }
  0xc4   :  { %v333_v24 = vadd.f32 %v329_v16, %v325_v19 }
  0xc5   :  { %v346_v25 = vpack.c.bf16 %v343_v23, %v342_v21  ;;  %v340_v26 = vadd.f32 %v873_v59, %v332_v20 }
  0xc6   :  { %v341_v27 = vadd.f32 %v873_v59, %v333_v24 }
  0xc7   :  { %516 = vmatmul.bf16.vlgmr.msra.gmra.mxu3 %v346_v25  ;;  %535 = vmatmul.bf16.vlgmr.msrb.gmra.mxu0 %v346_v25  ;;  %v344_v29 = vmax.f32 %v340_v26, 0.0 }
  0xc8   :  { %554 = vmatmul.bf16.vlgmr.msrb.gmra.mxu1 %v346_v25  ;;  %v345_v30 = vmax.f32 %v341_v27, 0.0 }
  0xca   :  { %v347_v32 = vpack.c.bf16 %v345_v30, %v344_v29 }
  0xcc   :  { %540 = vmatmul.bf16.vlgmr.msrb.gmra.mxu2 %v347_v32 }
  0xd7   :  { %521 = vmatmul.bf16.gmra.mxu3 %v347_v32 }
  0xe7   :  { %559 = vmatmul.bf16.vlgmr.msrb.gmra.mxu3 %v347_v32 }
 0x144   :  { %v536_v22 = vpop.f32.mrf.mxu0 }
 0x145   :  { %v555_v35 = vpop.f32.mrf.mxu1 }
 0x146   :  { %v577_v40 = vrot.slane %v555_v35, 1 }
 0x14a   :  { %v517_v28 = vpop.f32.mrf.mxu3 }
 0x14b   :  { %v565_v39 = vrot.slane %v517_v28, 7 }
 0x14c   :  { %v538_v58 = vpop.f32.mrf.mxu0 }
 0x14d   :  { %v557_v37 = vpop.f32.mrf.mxu1 }
 0x14e   :  { %v578_v42 = vrot.slane %v557_v37, 1 }
 0x14f   :  { %v541_v50 = vpop.f32.mrf.mxu2 }
 0x150   :  { %v583_v48 = vsel %vm309_vm2, %v577_v40, %v578_v42 }
 0x152   :  { %v519_v33 = vpop.f32.mrf.mxu3 }
 0x153   :  { %v566_v43 = vrot.slane %v519_v33, 7 }
 0x155   :  { %v571_v52 = vsel %vm288_vm0, %v565_v39, %v566_v43 }
 0x156   :  { %v590_v51 = vadd.f32 %v571_v52, %v538_v58 }
 0x157   :  { %v543_v5 = vpop.f32.mrf.mxu2 }
 0x15a   :  { %v522_v36 = vpop.f32.mrf.mxu3 }
 0x15b   :  { %v567_v53 = vrot.slane %v522_v36, 7 }
 0x15d   :  { %v570_v61 = vsel %vm288_vm0, %v566_v43, %v567_v53 }
 0x15e   :  { %v575_v0 = vsel %vm1269_vm4, %v570_v61, 0.0 }
 0x15f   :  { %v591_v8 = vadd.f32 %v575_v0, %v541_v50 }
 0x162   :  { %v524_v38 = vpop.f32.mrf.mxu3 }
 0x163   :  { %v568_v41 = vrot.slane %v524_v38, 7 }
 0x165   :  { %v572_v31 = vsel %vm288_vm0, %v568_v41, %v565_v39 }
 0x166   :  { %v573_v44 = vsel %vm1262_vm3, %v572_v31, 0.0 }
 0x167   :  { %v589_v45 = vadd.f32 %v573_v44, %v536_v22 }
 0x169   :  { %v593_v49 = vadd.f32 %v589_v45, %v583_v48 }
 0x16a   :  { %v560_v54 = vpop.f32.mrf.mxu3 }
 0x16b   :  { %v601_v56 = vadd.f32 %v874_v46, %v593_v49  ;;  %v579_v57 = vrot.slane %v560_v54, 1 }
 0x16d   :  { %v605_v59 = vadd.f32 %v601_v56, %v1052_v6  ;;  %v582_v60 = vsel %vm309_vm2, %v578_v42, %v579_v57  ;;  %v569_v6 = vsel %vm288_vm0, %v567_v53, %v568_v41 }
 0x16e   :  { %v586_v62 = vsel %vm1256_vm1, %v582_v60, 0.0  ;;  %v592_v47 = vadd.f32 %v569_v6, %v543_v5 }
 0x16f   :  { %609 = vst [vmem:[%s1351_s5] sm:$0xff] %v605_v59  ;;  %v594_v63 = vadd.f32 %v590_v51, %v586_v62 }
 0x171   :  { %v602_v1 = vadd.f32 %v874_v46, %v594_v63 }
 0x172   :  { %v562_v2 = vpop.f32.mrf.mxu3 }
 0x173   :  { %v606_v3 = vadd.f32 %v602_v1, %v1057_v7  ;;  %v580_v4 = vrot.slane %v562_v2, 1 }
 0x175   :  { %610 = vst [vmem:[%s1351_s5 + $0x8] sm:$0xff] %v606_v3  ;;  %v581_v9 = vsel %vm309_vm2, %v579_v57, %v580_v4  ;;  %v584_v55 = vsel %vm309_vm2, %v580_v4, %v577_v40 }
 0x176   :  { %v588_v13 = vsel %vm1292_vm5, %v584_v55, 0.0  ;;  %v595_v14 = vadd.f32 %v591_v8, %v581_v9 }
 0x177   :  { %v596_v15 = vadd.f32 %v592_v47, %v588_v13 }
 0x178   :  { %v603_v7 = vadd.f32 %v874_v46, %v595_v14 }
 0x179   :  { %v604_v16 = vadd.f32 %v874_v46, %v596_v15 }
 0x17a   :  { %v607_v17 = vadd.f32 %v603_v7, %v1064_v11 }
 0x17b   :  { %v608_v18 = vadd.f32 %v604_v16, %v1069_v12 }
 0x17c   :  { %611 = vst [vmem:[%s1351_s5 + $0x10] sm:$0xff] %v607_v17 }
 0x17d   :  { %612 = vst [vmem:[%s1351_s5 + $0x18] sm:$0xff] %v608_v18 }

</bundles_post_ra>
